<compile_context>
chip_gen: v7x
topology: tpu7x:2x2x1
jax: 0.10.0
libtpu: 0.0.40
codegen_flags: <defaults>
</compile_context>

<pallas_src>
import jax
import jax.numpy as jnp
import numpy as np
from jax.experimental import pallas as pl
from jax.experimental.pallas import tpu as pltpu


# ----------------------------------------------------------------------------- kernels
def _highway_kernel_fused(x_ref, w_ref, b_ref, o_ref):
    # x_ref: (tm, H);  w_ref: (H, 2H) = [Wt^T | Wh^T] (bf16);  b_ref: (1, 2H) f32.
    x = x_ref[...]
    h_dim = o_ref.shape[-1]

    # Single fused MXU matmul, f32 accumulation.
    lin = jnp.dot(x.astype(w_ref.dtype), w_ref[...],
                  preferred_element_type=jnp.float32) + b_ref[...]

    # Lane-boundary split (free when H % 128 == 0).
    t_lin = lin[:, :h_dim]
    h_lin = lin[:, h_dim:]

    # sigmoid via one EUP tanh; ReLU on the VPU.
    t_gate = 0.5 * (jnp.tanh(0.5 * t_lin) + 1.0)
    h_act = jnp.maximum(h_lin, 0.0)

    # Highway combine: h*t + (1-t)*x == x + t*(h - x)  (one fewer vmul per vreg).
    xf = x.astype(jnp.float32)
    o_ref[...] = (xf + t_gate * (h_act - xf)).astype(o_ref.dtype)


def _highway_kernel_split(x_ref, wt_ref, bt_ref, wh_ref, bh_ref, o_ref):
    # Used when H % 128 != 0: two separate dots avoid a non-lane-aligned split.
    x = x_ref[...]
    xc = x.astype(wt_ref.dtype)
    t_lin = jnp.dot(xc, wt_ref[...], preferred_element_type=jnp.float32) + bt_ref[...]
    h_lin = jnp.dot(xc, wh_ref[...], preferred_element_type=jnp.float32) + bh_ref[...]
    t_gate = 0.5 * (jnp.tanh(0.5 * t_lin) + 1.0)
    h_act = jnp.maximum(h_lin, 0.0)
    xf = x.astype(jnp.float32)
    o_ref[...] = (xf + t_gate * (h_act - xf)).astype(o_ref.dtype)


# --------------------------------------------------------------------------- utilities
def _round_up(a, b):
    return -(-a // b) * b


def _const_spec(shape, single_buffer):
    """BlockSpec for a grid-invariant operand (weights / bias)."""
    idx = lambda i: (0, 0)
    if single_buffer:
        try:
            # Constant index_map -> double buffering buys nothing; halve its VMEM.
            return pl.BlockSpec(shape, idx, pipeline_mode=pl.Buffered(1))
        except Exception:  # older jax without pipeline_mode support
            pass
    return pl.BlockSpec(shape, idx)


def prepare_highway_params(w_t, b_t, w_h, b_h, compute_dtype=jnp.bfloat16):
    """One-time parameter prep (call outside the per-step path).

    w_t / w_h are in PyTorch nn.Linear layout [out, in]; they are transposed here so
    the kernel computes x @ W^T + b exactly like torch.  Weights are cast to
    `compute_dtype` (bf16 by default) for the MXU; biases stay f32 (added to the f32
    accumulator).
    """
    H = w_t.shape[0]
    if H % 128 == 0:
        w_fused = jnp.concatenate([w_t.T, w_h.T], axis=1).astype(compute_dtype)  # (H, 2H)
        b_fused = jnp.concatenate([b_t, b_h]).reshape(1, 2 * H).astype(jnp.float32)
        return ("fused", w_fused, b_fused)
    return ("split",
            w_t.T.astype(compute_dtype), b_t.reshape(1, H).astype(jnp.float32),
            w_h.T.astype(compute_dtype), b_h.reshape(1, H).astype(jnp.float32))


# ----------------------------------------------------------------------------- wrapper
def highway_forward(x, params, *, tm=512, out_dtype=None):
    """Highway forward.  x: [..., H] (f32 or bf16); params from prepare_highway_params."""
    kind = params[0]
    orig_shape = x.shape
    H = orig_shape[-1]
    x2d = x.reshape(-1, H)
    M = x2d.shape[0]
    if out_dtype is None:
        out_dtype = x2d.dtype

    x_bytes = x2d.dtype.itemsize
    o_bytes = np.dtype(out_dtype).itemsize
    w_bytes = params[1].dtype.itemsize

    # Sublane granularity: packed (<32-bit) activations tile at 16 rows, f32 at 8.
    sub = 16 if min(x_bytes, o_bytes) < 4 else 8

    # ---- row-tile selection (VMEM budget sized for v7x's 64 MiB/TC) ----------------
    weight_bytes = 2 * H * H * w_bytes + 8 * 2 * H * 4        # fused weight + padded bias
    budget = 48 << 20
    per_row = 2 * H * (x_bytes + o_bytes)                     # double-buffered x + out tiles
    avail = max(budget - 2 * weight_bytes, 2 << 20)
    tm_cap = max(sub, (avail // per_row) // sub * sub)
    tm = min(_round_up(max(tm, sub), sub), tm_cap)
    if M > sub:                                               # v7x: keep >= 2 tiles so the
        tm = min(tm, max(sub, _round_up(pl.cdiv(M, 2), sub))) # parallel axis shards 2 TCs
    tm = max(sub, min(tm, _round_up(M, sub)))
    n_tiles = pl.cdiv(M, tm)                                  # ragged edge block is masked

    # ---- specs / operands -----------------------------------------------------------
    x_spec = pl.BlockSpec((tm, H), lambda i: (i, 0))
    o_spec = pl.BlockSpec((tm, H), lambda i: (i, 0))

    if kind == "fused":
        kernel = _highway_kernel_fused
        _, w, b = params
        operands = (x2d, w, b)
        const_shapes = [(H, 2 * H), (1, 2 * H)]
    else:
        kernel = _highway_kernel_split
        _, w_t, b_t, w_h, b_h = params
        operands = (x2d, w_t, b_t, w_h, b_h)
        const_shapes = [(H, H), (1, H), (H, H), (1, H)]

    # Explicit scoped-VMEM limit (v5e defaults to only 16 MiB); generous: assumes the
    # single-buffer request might be ignored.
    vmem_needed = 2 * tm * H * (x_bytes + o_bytes) + 2 * weight_bytes + (2 << 20)
    vmem_limit = int(min(max(vmem_needed, 32 << 20), 100 << 20))

    cost = pl.CostEstimate(
        flops=4 * M * H * H,                                   # (tm,H) x (H,2H) per tile
        transcendentals=M * H,                                 # one tanh per gate element
        bytes_accessed=M * H * (x_bytes + o_bytes) + 2 * H * H * w_bytes + 2 * H * 4,
    )

    def run(single_buffer_weights):
        in_specs = [x_spec] + [_const_spec(s, single_buffer_weights) for s in const_shapes]
        return pl.pallas_call(
            kernel,
            out_shape=jax.ShapeDtypeStruct((M, H), out_dtype),
            grid_spec=pltpu.PrefetchScalarGridSpec(
                num_scalar_prefetch=0,
                grid=(n_tiles,),
                in_specs=in_specs,
                out_specs=o_spec,
            ),
            compiler_params=pltpu.CompilerParams(
                dimension_semantics=("parallel",),
                vmem_limit_bytes=vmem_limit,
            ),
            cost_estimate=cost,
        )(*operands)

    try:
        out = run(True)          # weights/bias single-buffered (constant index_map)
    except Exception:            # fall back if Buffered(1) is rejected by this jax/Mosaic
        out = run(False)

    return out.reshape(orig_shape[:-1] + (H,))


# --------------------------------------------------------------------------- reference
def reference_forward(x, w_t, b_t, w_h, b_h):
    # PyTorch semantics: Linear(x) = x @ W^T + b, W stored [out, in].
    t = jax.nn.sigmoid(x @ w_t.T + b_t)
    h = jnp.maximum(x @ w_h.T + b_h, 0.0)
    return h * t + (1.0 - t) * x


# --------------------------------------------------------------------------------- main
if __name__ == "__main__":
    B, S, H = 2, 8, 128

    key = jax.random.PRNGKey(0)
    kx, kwt, kbt, kwh, kbh = jax.random.split(key, 5)

    x = jax.random.normal(kx, (B, S, H), dtype=jnp.float32)

    # PyTorch nn.Linear init / layout: weight [out, in] ~ U(-1/sqrt(in), 1/sqrt(in)).
    bound = 1.0 / float(np.sqrt(H))
    w_t = jax.random.uniform(kwt, (H, H), jnp.float32, -bound, bound)
    b_t = jax.random.uniform(kbt, (H,), jnp.float32, -bound, bound)
    w_h = jax.random.uniform(kwh, (H, H), jnp.float32, -bound, bound)
    b_h = jax.random.uniform(kbh, (H,), jnp.float32, -bound, bound)

    ref = reference_forward(x, w_t, b_t, w_h, b_h)

    # Parameter prep (transpose + fuse + bf16 cast) done ONCE, outside the call path.
    params = prepare_highway_params(w_t, b_t, w_h, b_h)

    # 1) f32 activations, bf16 weights, fused (H,2H) matmul, multi-tile parallel grid.
    out = jax.block_until_ready(highway_forward(x, params))
    assert out.shape == x.shape and out.dtype == x.dtype
    assert jnp.allclose(out, ref, atol=5e-2, rtol=5e-2), "mismatch (fused f32 path)"

    # 2) Ragged M (no pad / slice round trip; Pallas masks the edge block).
    x_rag = x.reshape(-1, H)[:15].reshape(1, 15, H)
    ref_rag = reference_forward(x_rag, w_t, b_t, w_h, b_h)
    out_rag = jax.block_until_ready(highway_forward(x_rag, params, tm=8))
    assert out_rag.shape == x_rag.shape
    assert jnp.allclose(out_rag, ref_rag, atol=5e-2, rtol=5e-2), "mismatch (ragged path)"

    # 3) Fully-bf16 activation path (halves x/out HBM traffic — the mem-bound lever).
    x_bf = x.astype(jnp.bfloat16)
    out_bf = jax.block_until_ready(highway_forward(x_bf, params))
    assert out_bf.dtype == jnp.bfloat16
    assert jnp.allclose(out_bf.astype(jnp.float32), ref, atol=1e-1, rtol=1e-1), \
        "mismatch (bf16 activation path)"

    # 4) H % 128 != 0 deployment case: two separate dots instead of fused + lane split.
    H2 = 64
    bound2 = 1.0 / float(np.sqrt(H2))
    x2 = jax.random.normal(kx, (B, S, H2), dtype=jnp.float32)
    w_t2 = jax.random.uniform(kwt, (H2, H2), jnp.float32, -bound2, bound2)
    b_t2 = jax.random.uniform(kbt, (H2,), jnp.float32, -bound2, bound2)
    w_h2 = jax.random.uniform(kwh, (H2, H2), jnp.float32, -bound2, bound2)
    b_h2 = jax.random.uniform(kbh, (H2,), jnp.float32, -bound2, bound2)
    params2 = prepare_highway_params(w_t2, b_t2, w_h2, b_h2)
    ref2 = reference_forward(x2, w_t2, b_t2, w_h2, b_h2)
    out2 = jax.block_until_ready(highway_forward(x2, params2))
    assert jnp.allclose(out2, ref2, atol=5e-2, rtol=5e-2), "mismatch (split-kernel path)"

    print("KERNEL_OK")
</pallas_src>

<mosaic_0001>
module attributes {stable_mosaic.version = 11 : i64} {
  func.func @_highway_kernel_fused(%arg0: i32, %arg1: memref<8x128xf32, #tpu.memory_space<vmem>>, %arg2: memref<128x256xbf16, #tpu.memory_space<vmem>>, %arg3: memref<1x256xf32, #tpu.memory_space<vmem>>, %arg4: memref<8x128xf32, #tpu.memory_space<vmem>>) attributes {dimension_semantics = [#tpu.dimension_semantics<parallel>], iteration_bounds = array<i64: 2>, scalar_prefetch = 0 : i64, scratch_operands = 0 : i64, tpu.core_type = #tpu.core_type<tc>, window_params = [{transform_indices = @transform_0, window_bounds = array<i64: 8, 128>}, {pipeline_mode = #tpu.pipeline_mode<synchronous>, transform_indices = @transform_1, window_bounds = array<i64: 128, 256>}, {pipeline_mode = #tpu.pipeline_mode<synchronous>, transform_indices = @transform_2, window_bounds = array<i64: 1, 256>}, {transform_indices = @transform_3, window_bounds = array<i64: 8, 128>}]} {
    %c0 = arith.constant 0 : index
    %c0_0 = arith.constant 0 : index
    %0 = vector.load %arg1[%c0, %c0_0] : memref<8x128xf32, #tpu.memory_space<vmem>>, vector<8x128xf32>
    %1 = arith.truncf %0 : vector<8x128xf32> to vector<8x128xbf16>
    %c0_1 = arith.constant 0 : index
    %c0_2 = arith.constant 0 : index
    %2 = vector.load %arg2[%c0_1, %c0_2] : memref<128x256xbf16, #tpu.memory_space<vmem>>, vector<128x256xbf16>
    %cst = arith.constant dense<0.000000e+00> : vector<8x256xf32>
    %3 = tpu.matmul %1, %2, %cst {dimension_numbers = #tpu.dot_dimension_numbers<[1], [0], [0], [1], [0, 0, 1, 1], [], []>} : vector<8x128xbf16>, vector<128x256xbf16>, vector<8x256xf32> -> vector<8x256xf32>
    %c0_3 = arith.constant 0 : index
    %c0_4 = arith.constant 0 : index
    %4 = vector.load %arg3[%c0_3, %c0_4] : memref<1x256xf32, #tpu.memory_space<vmem>>, vector<1x256xf32>
    %5 = vector.broadcast %4 : vector<1x256xf32> to vector<8x256xf32>
    %6 = arith.addf %3, %5 : vector<8x256xf32>
    %7 = vector.extract_strided_slice %6 {offsets = [0, 0], sizes = [8, 128], strides = [1, 1]} : vector<8x256xf32> to vector<8x128xf32>
    %8 = vector.extract_strided_slice %6 {offsets = [0, 128], sizes = [8, 128], strides = [1, 1]} : vector<8x256xf32> to vector<8x128xf32>
    %cst_5 = arith.constant 5.000000e-01 : f32
    %9 = vector.broadcast %cst_5 : f32 to vector<8x128xf32>
    %10 = arith.mulf %9, %7 : vector<8x128xf32>
    %11 = math.tanh %10 : vector<8x128xf32>
    %cst_6 = arith.constant 1.000000e+00 : f32
    %12 = vector.broadcast %cst_6 : f32 to vector<8x128xf32>
    %13 = arith.addf %11, %12 : vector<8x128xf32>
    %cst_7 = arith.constant 5.000000e-01 : f32
    %14 = vector.broadcast %cst_7 : f32 to vector<8x128xf32>
    %15 = arith.mulf %14, %13 : vector<8x128xf32>
    %cst_8 = arith.constant 0.000000e+00 : f32
    %16 = vector.broadcast %cst_8 : f32 to vector<8x128xf32>
    %17 = arith.maximumf %8, %16 : vector<8x128xf32>
    %18 = arith.subf %17, %0 : vector<8x128xf32>
    %19 = arith.mulf %15, %18 : vector<8x128xf32>
    %20 = arith.addf %0, %19 : vector<8x128xf32>
    %c0_9 = arith.constant 0 : index
    %c0_10 = arith.constant 0 : index
    %21 = vector.load %arg4[%c0_9, %c0_10] : memref<8x128xf32, #tpu.memory_space<vmem>>, vector<8x128xf32>
    tpu.vector_store %arg4[%c0_9, %c0_10], %20 {strides = array<i32>} : memref<8x128xf32, #tpu.memory_space<vmem>>, vector<8x128xf32>,
    return
  }
  func.func @transform_0(%arg0: i32) -> (i32, i32) {
    %c0_i32 = arith.constant 0 : i32
    %c0_i32_0 = arith.constant 0 : i32
    return %arg0, %c0_i32 : i32, i32
  }
  func.func @transform_1(%arg0: i32) -> (i32, i32) {
    %c0_i32 = arith.constant 0 : i32
    %c0_i32_0 = arith.constant 0 : i32
    %c0_i32_1 = arith.constant 0 : i32
    return %c0_i32, %c0_i32_0 : i32, i32
  }
  func.func @transform_2(%arg0: i32) -> (i32, i32) {
    %c0_i32 = arith.constant 0 : i32
    %c0_i32_0 = arith.constant 0 : i32
    %c0_i32_1 = arith.constant 0 : i32
    return %c0_i32, %c0_i32_0 : i32, i32
  }
  func.func @transform_3(%arg0: i32) -> (i32, i32) {
    %c0_i32 = arith.constant 0 : i32
    %c0_i32_0 = arith.constant 0 : i32
    return %arg0, %c0_i32 : i32, i32
  }
}

module attributes {stable_mosaic.version = 11 : i64} {
  func.func @_highway_kernel_fused(%arg0: i32, %arg1: memref<8x128xf32, #tpu.memory_space<vmem>>, %arg2: memref<128x256xbf16, #tpu.memory_space<vmem>>, %arg3: memref<1x256xf32, #tpu.memory_space<vmem>>, %arg4: memref<8x128xf32, #tpu.memory_space<vmem>>) attributes {dimension_semantics = [#tpu.dimension_semantics<parallel>], iteration_bounds = array<i64: 2>, scalar_prefetch = 0 : i64, scratch_operands = 0 : i64, tpu.core_type = #tpu.core_type<tc>, window_params = [{transform_indices = @transform_0, window_bounds = array<i64: 8, 128>}, {pipeline_mode = #tpu.pipeline_mode<synchronous>, transform_indices = @transform_1, window_bounds = array<i64: 128, 256>}, {pipeline_mode = #tpu.pipeline_mode<synchronous>, transform_indices = @transform_2, window_bounds = array<i64: 1, 256>}, {transform_indices = @transform_3, window_bounds = array<i64: 8, 128>}]} {
    %c0 = arith.constant 0 : index
    %c0_0 = arith.constant 0 : index
    %0 = vector.load %arg1[%c0, %c0_0] : memref<8x128xf32, #tpu.memory_space<vmem>>, vector<8x128xf32>
    %1 = arith.truncf %0 : vector<8x128xf32> to vector<8x128xbf16>
    %c0_1 = arith.constant 0 : index
    %c0_2 = arith.constant 0 : index
    %2 = vector.load %arg2[%c0_1, %c0_2] : memref<128x256xbf16, #tpu.memory_space<vmem>>, vector<128x256xbf16>
    %cst = arith.constant dense<0.000000e+00> : vector<8x256xf32>
    %3 = tpu.matmul %1, %2, %cst {dimension_numbers = #tpu.dot_dimension_numbers<[1], [0], [0], [1], [0, 0, 1, 1], [], []>} : vector<8x128xbf16>, vector<128x256xbf16>, vector<8x256xf32> -> vector<8x256xf32>
    %c0_3 = arith.constant 0 : index
    %c0_4 = arith.constant 0 : index
    %4 = vector.load %arg3[%c0_3, %c0_4] : memref<1x256xf32, #tpu.memory_space<vmem>>, vector<1x256xf32>
    %5 = vector.broadcast %4 : vector<1x256xf32> to vector<8x256xf32>
    %6 = arith.addf %3, %5 : vector<8x256xf32>
    %7 = vector.extract_strided_slice %6 {offsets = [0, 0], sizes = [8, 128], strides = [1, 1]} : vector<8x256xf32> to vector<8x128xf32>
    %8 = vector.extract_strided_slice %6 {offsets = [0, 128], sizes = [8, 128], strides = [1, 1]} : vector<8x256xf32> to vector<8x128xf32>
    %cst_5 = arith.constant 5.000000e-01 : f32
    %9 = vector.broadcast %cst_5 : f32 to vector<8x128xf32>
    %10 = arith.mulf %9, %7 : vector<8x128xf32>
    %11 = math.tanh %10 : vector<8x128xf32>
    %cst_6 = arith.constant 1.000000e+00 : f32
    %12 = vector.broadcast %cst_6 : f32 to vector<8x128xf32>
    %13 = arith.addf %11, %12 : vector<8x128xf32>
    %cst_7 = arith.constant 5.000000e-01 : f32
    %14 = vector.broadcast %cst_7 : f32 to vector<8x128xf32>
    %15 = arith.mulf %14, %13 : vector<8x128xf32>
    %cst_8 = arith.constant 0.000000e+00 : f32
    %16 = vector.broadcast %cst_8 : f32 to vector<8x128xf32>
    %17 = arith.maximumf %8, %16 : vector<8x128xf32>
    %18 = arith.subf %17, %0 : vector<8x128xf32>
    %19 = arith.mulf %15, %18 : vector<8x128xf32>
    %20 = arith.addf %0, %19 : vector<8x128xf32>
    %c0_9 = arith.constant 0 : index
    %c0_10 = arith.constant 0 : index
    %21 = vector.load %arg4[%c0_9, %c0_10] : memref<8x128xf32, #tpu.memory_space<vmem>>, vector<8x128xf32>
    tpu.vector_store %arg4[%c0_9, %c0_10], %20 {strides = array<i32>} : memref<8x128xf32, #tpu.memory_space<vmem>>, vector<8x128xf32>,
    return
  }
  func.func @transform_0(%arg0: i32) -> (i32, i32) {
    %c0_i32 = arith.constant 0 : i32
    %c0_i32_0 = arith.constant 0 : i32
    return %arg0, %c0_i32 : i32, i32
  }
  func.func @transform_1(%arg0: i32) -> (i32, i32) {
    %c0_i32 = arith.constant 0 : i32
    %c0_i32_0 = arith.constant 0 : i32
    %c0_i32_1 = arith.constant 0 : i32
    return %c0_i32, %c0_i32_0 : i32, i32
  }
  func.func @transform_2(%arg0: i32) -> (i32, i32) {
    %c0_i32 = arith.constant 0 : i32
    %c0_i32_0 = arith.constant 0 : i32
    %c0_i32_1 = arith.constant 0 : i32
    return %c0_i32, %c0_i32_0 : i32, i32
  }
  func.func @transform_3(%arg0: i32) -> (i32, i32) {
    %c0_i32 = arith.constant 0 : i32
    %c0_i32_0 = arith.constant 0 : i32
    return %arg0, %c0_i32 : i32, i32
  }
}

</mosaic_0001>

<bundles_post_ra>
// kernel: tpu_custom_call.1
= control target key start
LH: loop header
LB: loop body
LE: loop exit
PB: predicated region body
PF: predicated region fallthrough
CT: control target
= control target key end

     0   :  { %8 = vsyncpa [#allocation3], 0  ;;  %s934_s0 = inlined_call_operand.hbm [shape: f32[16,128], index: 0, kind: input, shape index: {}]   ;;  %s935_s1 = inlined_call_operand.hbm [shape: bf16[128,256], index: 1, kind: input, shape index: {}]   ;;  %s936_s2 = inlined_call_operand.vmem [shape: f32[1,256], index: 2, kind: input, shape index: {}]   ;;  %s937_s3 = inlined_call_operand.hbm [shape: f32[16,128], index: 3, kind: output, shape index: {}]  }
   0x1   :  { %10 = vsyncpa [#allocation3 + $0x1], 0 }
   0x2   :  { %11 = vsyncpa [#allocation6], 0 }
   0x3   :  { %12 = vsyncpa [#allocation4], 0 }
   0x4   :  { %14 = vsyncpa [#allocation4 + $0x1], 0  ;;  %s728_s12 = smov 0   ;;  %s730_s13 = smov 0  }
   0x5   :  { %s732_s14 = smov 0   ;;  %s734_s15 = smov 0  }
   0x6 LB: > { %s749_s16 = sadd.s32 4294967295, %s700_s15   ;;  %s456_s17 = sadd.s32 4294967294, %s700_s15   ;;  %s700_s15 = sphi %s734_s15, %s957_s15   ;;  %s696_s14 = sphi %s732_s14, %s956_s14   ;;  %s692_s13 = sphi %s730_s13, %s955_s13   ;;  %s688_s12 = sphi %s728_s12, %s954_s12  }
   0x7   : > { %p40_p0 = scmp.ne.s32.totalorder %s692_s13, %s688_s12  ;;  %p938_p1 = scmp.eq.s32.totalorder %s749_s16, 0 }
   0x8   : > { %p112_p3 = scmp.eq.s32.totalorder %s456_s17, 1  ;;  %p457_p5 = scmp.ge.s32.totalorder %s700_s15, 1 }
   0x9   : > { %p758_p4 = por %p938_p1, %p40_p0  ;;  %p119_p7 = scmp.lt.s32.totalorder %s700_s15, 3 }
   0xa   : > { %p763_p6 = por %p112_p3, %p40_p0  ;;  %s702_s21 = smov [#allocation5]  }
   0xb   : > { %s941_s18 = scalar_select %p758_p4, 1, 0 }
   0xc   : > { %s942_s19 = scalar_select %p763_p6, 1, 0 }
   0xd   : > { %p768_p8 = pnand %p457_p5, %p119_p7  ;;  %s131_s22 = sshll.u32 %s702_s21, 4  ;;  %s772_s22 = int_to_ptr.vmem [resolvable:$true] %s131_s22 }
   0xe   : > { %s784_s24 = sadd.s32 1, %s700_s15   ;;  %s27_s25 = sadd.s32 1, %s696_s14 }
   0xf   : > { %s943_s20 = scalar_select %p768_p8, 1, 0 }
  0x10   : > { %p494_p9 = pneg %p768_p8  ;;  %s24_s26 = ssub.s32 %s700_s15, %s784_s24 }
  0x11   : > { %s572_s29 = scalar_lea.hbm %s935_s1, 2048 }
  0x12   : > { %p779_p11 = pnand %p494_p9, %p938_p1  ;;  %p573_p12 = scmp.ne.s32.totalorder %s935_s1, %s572_s29 }
  0x13   : > { %p579_p5 = scmp.lt.u32.totalorder %s572_s29, %s935_s1 }
  0x14   : > { %p574_p13 = pneg %p779_p11 }
  0x16   : > { %p575_p0 = pnand %p574_p13, %p573_p12 }
  0x18   : > { %p576_p3 = pneg %p575_p0 }
  0x1a   : > { %p581_p7 = pnand %p579_p5, %p576_p3 }
  0x1c   : > { %584 = shalt.err (!%p581_p7)
}
  0x1d   : > { %s585_s7 = scalar_lea.vmem %s772_s22, 2048  ;;  %p593_p2 = scmp.lt.s32.totalorder %s772_s22, %s772_s22 }
  0x1e   : > { %p586_p9 = scmp.ne.s32.totalorder %s772_s22, %s585_s7  ;;  %p594_p6 = scmp.lt.s32.totalorder %s585_s7, %s585_s7 }
  0x20   : > { %p588_p10 = pnand %p586_p9, %p574_p13  ;;  %p595_p4 = por %p594_p6, %p593_p2 }
  0x22   : > { %p589_p1 = pneg %p588_p10 }
  0x24   : > { %p596_p8 = pnand %p595_p4, %p589_p1 }
  0x26   : > { %599 = shalt.err (!%p596_p8)
}
  0x27   : > { %s703_s8 = smov 128   ;;  %s704_s9 = smov 8  }
  0x28   : > { %497 = dma.hbm_to_vmem [thread:$0]  (!%p779_p11), %s935_s1, 2048, %s772_s22, [#allocation6], %s703_s8, %s703_s8, %s704_s9  }
  0x29   : > { %p25_p2 = scmp.eq.s32.totalorder %s24_s26, 0  ;;  %p34_p1 = scmp.ne.s32.totalorder %s696_s14, %s692_s13 }
  0x2a   : > { %p35_p4 = scmp.eq.s32.totalorder %s700_s15, 0  ;;  %p507_p6 = scmp.lt.s32.totalorder %s700_s15, 2 }
  0x2b   : > { %s815_s17 = scalar_select %p25_p2, %s696_s14, %s27_s25  }
  0x2c   : > { %p36_p8 = por %p35_p4, %p34_p1  ;;  %p945_p10 = scmp.eq.s32.totalorder %s749_s16, 1 }
  0x2d   : > { %s148_s27 = sand.u32 1, %s696_s14   ;;  %s461_s28 = sshll.u32 %s700_s15, 7 }
  0x2e   : > { %p819_p12 = por %p945_p10, %p34_p1  ;;  %s460_s29 = sshll.u32 %s148_s27, 3 }
  0x2f   : > { %s828_s4 = scalar_lea.hbm %s934_s0, %s461_s28  ;;  %s152_s22 = scalar_lea.vmem [#allocation2], %s460_s29 }
  0x30   : > { %s159_s25 = sshll.u32 %s152_s22, 4  ;;  %p830_p11 = pnand %p507_p6, %p36_p8  ;;  %s834_s25 = int_to_ptr.vmem [resolvable:$true] %s159_s25 }
  0x31   : > { %s149_s5 = scalar_lea.sflag [#allocation3], %s148_s27  ;;  %s600_s6 = scalar_lea.hbm %s828_s4, 128 }
  0x32   : > { %p601_p13 = scmp.ne.s32.totalorder %s828_s4, %s600_s6  ;;  %p602_p0 = pneg %p830_p11 }
  0x33   : > { %s605_s9 = scalar_lea.hbm %s934_s0, 256  ;;  %p606_p7 = scmp.lt.u32.totalorder %s828_s4, %s934_s0 }
  0x34   : > { %p603_p3 = pnand %p602_p0, %p601_p13  ;;  %p607_p9 = scmp.lt.u32.totalorder %s605_s9, %s600_s6 }
  0x35   : > { %p609_p1 = scmp.lt.u32.totalorder %s600_s6, %s828_s4 }
  0x36   : > { %p604_p5 = pneg %p603_p3  ;;  %p608_p2 = por %p607_p9, %p606_p7 }
  0x38   : > { %p610_p4 = por %p609_p1, %p608_p2 }
  0x3a   : > { %p611_p6 = pnand %p610_p4, %p604_p5 }
  0x3c   : > { %614 = shalt.err (!%p611_p6)
}
  0x3d   : > { %s615_s27 = scalar_lea.vmem %s834_s25, 128  ;;  %s705_s28 = smov [#allocation2]  }
  0x3e   : > { %p616_p8 = scmp.ne.s32.totalorder %s834_s25, %s615_s27  ;;  %s620_s29 = sshll.u32 %s705_s28, 4  ;;  %s621_s29 = int_to_ptr.vmem [resolvable:$false] %s620_s29 }
  0x3f   : > { %s622_s23 = scalar_lea.vmem %s621_s29, 256  ;;  %p623_p3 = scmp.lt.s32.totalorder %s834_s25, %s621_s29 }
  0x40   : > { %p618_p10 = pnand %p616_p8, %p602_p0  ;;  %p624_p7 = scmp.lt.s32.totalorder %s622_s23, %s615_s27 }
  0x42   : > { %p619_p13 = pneg %p618_p10  ;;  %p625_p9 = por %p624_p7, %p623_p3 }
  0x44   : > { %p626_p2 = pnand %p625_p9, %p619_p13 }
  0x46   : > { %629 = shalt.err (!%p626_p2)
}
  0x47   : > { %501 = dma.hbm_to_vmem [thread:$0]  (!%p830_p11), %s828_s4, 128, %s834_s25, %s149_s5  }
  0x48   : > { %p948_p5 = scmp.ne.s32.totalorder %s943_s20, 0 }
  0x49   : > { %s864_s30 = sand.u32 (!%p948_p5), 1, %s692_s13   ;;  %p949_p0 = scmp.ne.s32.totalorder (!%p948_p5), %s941_s18, 0 }
  0x4a   : > { %168 = sbr.rel (%p948_p5) target bundleno = 367 (0x16f), region = 32  ;;  %s463_s22 = sshll.u32 (!%p948_p5), %s864_s30, 3 }
  0x4b   : > { %s171_s6 = scalar_lea.sflag (!%p948_p5), [#allocation3], %s864_s30  ;;  %s870_s7 = scalar_lea.vmem (!%p948_p5), [#allocation2], %s463_s22 }
  0x51   : > { %675 = dma.done.wait (%p949_p0), %s171_s6, 128  }
  0x52   : > { %677 = vsyncadd (%p949_p0), %s171_s6, 4294967168  ;;  %p950_p11 = scmp.eq.s32.totalorder %s749_s16, 0 }
  0x54   : > { %679 = dma.done.wait (%p950_p11), [#allocation6], 2048   ;;  %p951_p1 = pmov %p950_p11 }
  0x55   : > { %v706_v0 = vmov 0   ;;  %v546_v1 = vld [vmem:[#allocation5 + $0x4] ss:$8 sps:$4 sm:$0xff]   ;;  %v548_v2 = vld [vmem:[#allocation5] ss:$8 sps:$4 sm:$0xff]   ;;  %v202_v17 = vld [vmem:[%s870_s7] sm:$0xff]  ;;  %v222_v19 = vlaneseq }
  0x56   : > { %681 = vsyncadd (%p951_p1), [#allocation6], 4294965248  ;;  %344 = vmatprep.mubr.bf16.mxu0 %v706_v0  ;;  %312 = vmatprep.subr.bf16.mxu0 %v546_v1  ;;  %v549_v3 = vld [vmem:[#allocation5 + $0x14] ss:$8 sps:$4 sm:$0xff]   ;;  %v551_v4 = vld [vmem:[#allocation5 + $0x10] ss:$8 sps:$4 sm:$0xff]   ;;  %v203_v18 = vpack.c.bf16 %v202_v17, %v202_v17 }
  0x57   : > { %313 = vmatpush1.bf16.msra.mxu0 %v548_v2  ;;  %v552_v5 = vld [vmem:[#allocation5 + $0x24] ss:$8 sps:$4 sm:$0xff]   ;;  %v554_v6 = vld [vmem:[#allocation5 + $0x20] ss:$8 sps:$4 sm:$0xff]   ;;  %v555_v7 = vld [vmem:[#allocation5 + $0x34] ss:$8 sps:$4 sm:$0xff]  }
  0x58   : > { %314 = vmatprep.subr.bf16.mxu0 %v549_v3  ;;  %v557_v8 = vld [vmem:[#allocation5 + $0x30] ss:$8 sps:$4 sm:$0xff]   ;;  %v558_v9 = vld [vmem:[#allocation5 + $0x44] ss:$8 sps:$4 sm:$0xff]   ;;  %v560_v10 = vld [vmem:[#allocation5 + $0x40] ss:$8 sps:$4 sm:$0xff]  }
  0x59   : > { %v561_v11 = vld [vmem:[#allocation5 + $0x54] ss:$8 sps:$4 sm:$0xff]   ;;  %v563_v12 = vld [vmem:[#allocation5 + $0x50] ss:$8 sps:$4 sm:$0xff]   ;;  %v564_v13 = vld [vmem:[#allocation5 + $0x64] ss:$8 sps:$4 sm:$0xff]  }
  0x5a   : > { %v566_v14 = vld [vmem:[#allocation5 + $0x60] ss:$8 sps:$4 sm:$0xff]   ;;  %v567_v15 = vld [vmem:[#allocation5 + $0x74] ss:$8 sps:$4 sm:$0xff]   ;;  %v569_v16 = vld [vmem:[#allocation5 + $0x70] ss:$8 sps:$4 sm:$0xff]  }
  0x5b   : > { %315 = vmatpush1.bf16.msra.mxu0 %v551_v4  ;;  %v223_v20 = vshrl.u32 %v222_v19, 7  ;;  %v220_v22 = vld [vmem:[%s936_s2] sm:$0x3]  ;;  %s483_s4 = sshll.u32 %s749_s16, 7  ;;  %s200_s25 = scalar_lea.vmem [#allocation7], %s463_s22 }
  0x5c   : > { %316 = vmatprep.subr.bf16.mxu0 %v552_v5  ;;  %s376_s26 = sshll.u32 %s200_s25, 4  ;;  %s890_s9 = scalar_lea.hbm %s937_s3, %s483_s4  ;;  %s892_s26 = int_to_ptr.vmem [resolvable:$true] %s376_s26 }
  0x5d   : > { %v224_v21 = vsub.s32 0, %v223_v20  ;;  %v228_v27 = vsub.s32 1, %v223_v20  ;;  %s363_s10 = scalar_lea.sflag [#allocation4], %s864_s30  ;;  %s630_s11 = scalar_lea.vmem %s892_s26, 128 }
  0x5e   : > { %p631_p4 = scmp.ne.s32.totalorder %s892_s26, %s630_s11  ;;  %s707_s16 = smov [#allocation7]  }
  0x5f   : > { %317 = vmatpush1.bf16.msra.mxu0 %v554_v6  ;;  %v225_v23 = vrot.slane %v220_v22, %v224_v21  ;;  %v229_v31 = vrot.slane %v220_v22, %v228_v27  ;;  %s634_s27 = sshll.u32 %s707_s16, 4  ;;  %s635_s27 = int_to_ptr.vmem [resolvable:$false] %s634_s27 }
  0x60   : > { %318 = vmatprep.subr.bf16.mxu0 %v555_v7  ;;  %p632_p6 = pnand %p631_p4, %p819_p12  ;;  %s636_s28 = scalar_lea.vmem %s635_s27, 256 }
  0x61   : > { %p637_p10 = scmp.lt.s32.totalorder %s892_s26, %s635_s27  ;;  %p638_p13 = scmp.lt.s32.totalorder %s636_s28, %s630_s11 }
  0x62   : > { %p633_p8 = pneg %p632_p6 }
  0x63   : > { %319 = vmatpush1.bf16.msra.mxu0 %v557_v8  ;;  %p639_p3 = por %p638_p13, %p637_p10 }
  0x64   : > { %320 = vmatprep.subr.bf16.mxu0 %v558_v9 }
  0x65   : > { %p640_p7 = pnand %p639_p3, %p633_p8 }
  0x67   : > { %321 = vmatpush1.bf16.msra.mxu0 %v560_v10 }
  0x68   : > { %322 = vmatprep.subr.bf16.mxu0 %v561_v11 }
  0x6b   : > { %323 = vmatpush1.bf16.msra.mxu0 %v563_v12 }
  0x6c   : > { %324 = vmatprep.subr.bf16.mxu0 %v564_v13 }
  0x6f   : > { %325 = vmatpush1.bf16.msra.mxu0 %v566_v14 }
  0x70   : > { %326 = vmatprep.subr.bf16.mxu0 %v567_v15 }
  0x73   : > { %327 = vmatpush1.bf16.msra.mxu0 %v569_v16 }
  0x76   : > { %345 = vmatmul.mubr.bf16.vlgmr.msra.gmra.mrb[0].mxu0 %v203_v18 }
 0x149   : > { %v346_v24 = vpop.f32.mrb[0].mxu0 }
 0x14a   : > { %v347_v25 = vadd.f32 %v346_v24, %v225_v23  ;;  %v348_v26 = vpop.f32.mrb[1].mxu0 }
 0x14b   : > { %v350_v28 = vpop.f32.mrb[2].mxu0  ;;  %v349_v32 = vadd.f32 %v348_v26, %v229_v31 }
 0x14c   : > { %v353_v29 = vmul.f32 0.5, %v347_v25  ;;  %v351_v30 = vpop.f32.mrb[3].mxu0 }
 0x14d   : > { %v357_v33 = vmax.f32 %v349_v32, 0.0 }
 0x14e   : > { %570 = vtanh.f32 %v353_v29 }
 0x14f   : > { %v358_v37 = vsub.f32 %v357_v33, %v202_v17 }
 0x158   : > { %v571_v34 = vpop.eup %570 }
 0x159   : > { %v355_v35 = vadd.f32 1.0, %v571_v34 }
 0x15b   : > { %v356_v36 = vmul.f32 0.5, %v355_v35 }
 0x15d   : > { %v359_v38 = vmul.f32 %v358_v37, %v356_v36 }
 0x15f   : > { %v360_v39 = vadd.f32 %v359_v38, %v202_v17 }
 0x161   : > { %361 = vst [vmem:[%s200_s25] sm:$0xff] %v360_v39 }
 0x162   : > { %643 = shalt.err (!%p640_p7)
}
 0x163   : > { %s644_s29 = scalar_lea.hbm %s890_s9, 128  ;;  %s648_s22 = scalar_lea.hbm %s937_s3, 256 }
 0x164   : > { %p645_p9 = scmp.ne.s32.totalorder %s890_s9, %s644_s29  ;;  %p649_p0 = scmp.lt.u32.totalorder %s890_s9, %s937_s3 }
 0x165   : > { %p650_p11 = scmp.lt.u32.totalorder %s648_s22, %s644_s29  ;;  %p652_p4 = scmp.lt.u32.totalorder %s644_s29, %s890_s9 }
 0x166   : > { %p646_p2 = pnand %p645_p9, %p819_p12 }
 0x167   : > { %p651_p1 = por %p650_p11, %p649_p0 }
 0x168   : > { %p647_p5 = pneg %p646_p2 }
 0x169   : > { %p653_p6 = por %p652_p4, %p651_p1 }
 0x16b   : > { %p654_p8 = pnand %p653_p6, %p647_p5 }
 0x16d   : > { %657 = shalt.err (!%p654_p8)
}
 0x16e   : > { %492 = dma.vmem_to_hbm [thread:$0]  (%p819_p12), %s892_s26, 128, %s890_s9, %s363_s10  }
 0x16f PF: > { %s388_s18 = sand.u32 1, %s688_s12   ;;  %p952_p10 = scmp.ne.s32.totalorder %s942_s19, 0 }
 0x170   : > { %p953_p13 = scmp.ge.s32.totalorder %s700_s15, 2  ;;  %s389_s20 = scalar_lea.sflag [#allocation4], %s388_s18 }
 0x172   : > { %p503_p3 = pnand %p953_p13, %p952_p10 }
 0x174   : > { %683 = dma.done.wait (!%p503_p3), %s389_s20, 128  }
 0x175   : > { %685 = vsyncadd (!%p503_p3), %s389_s20, 4294967168  ;;  %p17_p7 = scmp.ge.s32.totalorder %s784_s24, 4   ;;  %s954_s12 = smov %s692_s13 }
 0x176   : > { %s955_s13 = smov %s696_s14  ;;  %s956_s14 = smov %s815_s17 }
 0x177   : > { %s957_s15 = smov %s784_s24  ;;  %19 = sbr.rel (!%p17_p7) target bundleno = 6 (0x6), region = 81 }
 0x17e   :  { %394 = vsyncpa [#allocation3], 1 }
 0x17f   :  { %396 = vsyncpa [#allocation3 + $0x1], 1 }
 0x180   :  { %397 = vsyncpa [#allocation6], 1 }
 0x181   :  { %398 = vsyncpa [#allocation4], 1 }
 0x182   :  { %400 = vsyncpa [#allocation4 + $0x1], 1 }

// kernel: tpu_custom_call.1
= control target key start
LH: loop header
LB: loop body
LE: loop exit
PB: predicated region body
PF: predicated region fallthrough
CT: control target
= control target key end

     0   :  { %8 = vsyncpa [#allocation3], 0  ;;  %s934_s0 = inlined_call_operand.hbm [shape: f32[16,128], index: 0, kind: input, shape index: {}]   ;;  %s935_s1 = inlined_call_operand.hbm [shape: bf16[128,256], index: 1, kind: input, shape index: {}]   ;;  %s936_s2 = inlined_call_operand.vmem [shape: f32[1,256], index: 2, kind: input, shape index: {}]   ;;  %s937_s3 = inlined_call_operand.hbm [shape: f32[16,128], index: 3, kind: output, shape index: {}]  }
   0x1   :  { %10 = vsyncpa [#allocation3 + $0x1], 0 }
   0x2   :  { %11 = vsyncpa [#allocation6], 0 }
   0x3   :  { %12 = vsyncpa [#allocation4], 0 }
   0x4   :  { %14 = vsyncpa [#allocation4 + $0x1], 0  ;;  %s728_s12 = smov 0   ;;  %s730_s13 = smov 0  }
   0x5   :  { %s732_s14 = smov 0   ;;  %s734_s15 = smov 0  }
   0x6 LB: > { %s749_s16 = sadd.s32 4294967295, %s700_s15   ;;  %s456_s17 = sadd.s32 4294967294, %s700_s15   ;;  %s700_s15 = sphi %s734_s15, %s957_s15   ;;  %s696_s14 = sphi %s732_s14, %s956_s14   ;;  %s692_s13 = sphi %s730_s13, %s955_s13   ;;  %s688_s12 = sphi %s728_s12, %s954_s12  }
   0x7   : > { %p40_p0 = scmp.ne.s32.totalorder %s692_s13, %s688_s12  ;;  %p938_p1 = scmp.eq.s32.totalorder %s749_s16, 0 }
   0x8   : > { %p112_p3 = scmp.eq.s32.totalorder %s456_s17, 1  ;;  %p457_p5 = scmp.ge.s32.totalorder %s700_s15, 1 }
   0x9   : > { %p758_p4 = por %p938_p1, %p40_p0  ;;  %p119_p7 = scmp.lt.s32.totalorder %s700_s15, 3 }
   0xa   : > { %p763_p6 = por %p112_p3, %p40_p0  ;;  %s702_s21 = smov [#allocation5]  }
   0xb   : > { %s941_s18 = scalar_select %p758_p4, 1, 0 }
   0xc   : > { %s942_s19 = scalar_select %p763_p6, 1, 0 }
   0xd   : > { %p768_p8 = pnand %p457_p5, %p119_p7  ;;  %s131_s22 = sshll.u32 %s702_s21, 4  ;;  %s772_s22 = int_to_ptr.vmem [resolvable:$true] %s131_s22 }
   0xe   : > { %s784_s24 = sadd.s32 1, %s700_s15   ;;  %s27_s25 = sadd.s32 1, %s696_s14 }
   0xf   : > { %s943_s20 = scalar_select %p768_p8, 1, 0 }
  0x10   : > { %p494_p9 = pneg %p768_p8  ;;  %s24_s26 = ssub.s32 %s700_s15, %s784_s24 }
  0x11   : > { %s572_s29 = scalar_lea.hbm %s935_s1, 2048 }
  0x12   : > { %p779_p11 = pnand %p494_p9, %p938_p1  ;;  %p573_p12 = scmp.ne.s32.totalorder %s935_s1, %s572_s29 }
  0x13   : > { %p579_p5 = scmp.lt.u32.totalorder %s572_s29, %s935_s1 }
  0x14   : > { %p574_p13 = pneg %p779_p11 }
  0x16   : > { %p575_p0 = pnand %p574_p13, %p573_p12 }
  0x18   : > { %p576_p3 = pneg %p575_p0 }
  0x1a   : > { %p581_p7 = pnand %p579_p5, %p576_p3 }
  0x1c   : > { %584 = shalt.err (!%p581_p7)
}
  0x1d   : > { %s585_s7 = scalar_lea.vmem %s772_s22, 2048  ;;  %p593_p2 = scmp.lt.s32.totalorder %s772_s22, %s772_s22 }
  0x1e   : > { %p586_p9 = scmp.ne.s32.totalorder %s772_s22, %s585_s7  ;;  %p594_p6 = scmp.lt.s32.totalorder %s585_s7, %s585_s7 }
  0x20   : > { %p588_p10 = pnand %p586_p9, %p574_p13  ;;  %p595_p4 = por %p594_p6, %p593_p2 }
  0x22   : > { %p589_p1 = pneg %p588_p10 }
  0x24   : > { %p596_p8 = pnand %p595_p4, %p589_p1 }
  0x26   : > { %599 = shalt.err (!%p596_p8)
}
  0x27   : > { %s703_s8 = smov 128   ;;  %s704_s9 = smov 8  }
  0x28   : > { %497 = dma.hbm_to_vmem [thread:$0]  (!%p779_p11), %s935_s1, 2048, %s772_s22, [#allocation6], %s703_s8, %s703_s8, %s704_s9  }
  0x29   : > { %p25_p2 = scmp.eq.s32.totalorder %s24_s26, 0  ;;  %p34_p1 = scmp.ne.s32.totalorder %s696_s14, %s692_s13 }
  0x2a   : > { %p35_p4 = scmp.eq.s32.totalorder %s700_s15, 0  ;;  %p507_p6 = scmp.lt.s32.totalorder %s700_s15, 2 }
  0x2b   : > { %s815_s17 = scalar_select %p25_p2, %s696_s14, %s27_s25  }
  0x2c   : > { %p36_p8 = por %p35_p4, %p34_p1  ;;  %p945_p10 = scmp.eq.s32.totalorder %s749_s16, 1 }
  0x2d   : > { %s148_s27 = sand.u32 1, %s696_s14   ;;  %s461_s28 = sshll.u32 %s700_s15, 7 }
  0x2e   : > { %p819_p12 = por %p945_p10, %p34_p1  ;;  %s460_s29 = sshll.u32 %s148_s27, 3 }
  0x2f   : > { %s828_s4 = scalar_lea.hbm %s934_s0, %s461_s28  ;;  %s152_s22 = scalar_lea.vmem [#allocation2], %s460_s29 }
  0x30   : > { %s159_s25 = sshll.u32 %s152_s22, 4  ;;  %p830_p11 = pnand %p507_p6, %p36_p8  ;;  %s834_s25 = int_to_ptr.vmem [resolvable:$true] %s159_s25 }
  0x31   : > { %s149_s5 = scalar_lea.sflag [#allocation3], %s148_s27  ;;  %s600_s6 = scalar_lea.hbm %s828_s4, 128 }
  0x32   : > { %p601_p13 = scmp.ne.s32.totalorder %s828_s4, %s600_s6  ;;  %p602_p0 = pneg %p830_p11 }
  0x33   : > { %s605_s9 = scalar_lea.hbm %s934_s0, 256  ;;  %p606_p7 = scmp.lt.u32.totalorder %s828_s4, %s934_s0 }
  0x34   : > { %p603_p3 = pnand %p602_p0, %p601_p13  ;;  %p607_p9 = scmp.lt.u32.totalorder %s605_s9, %s600_s6 }
  0x35   : > { %p609_p1 = scmp.lt.u32.totalorder %s600_s6, %s828_s4 }
  0x36   : > { %p604_p5 = pneg %p603_p3  ;;  %p608_p2 = por %p607_p9, %p606_p7 }
  0x38   : > { %p610_p4 = por %p609_p1, %p608_p2 }
  0x3a   : > { %p611_p6 = pnand %p610_p4, %p604_p5 }
  0x3c   : > { %614 = shalt.err (!%p611_p6)
}
  0x3d   : > { %s615_s27 = scalar_lea.vmem %s834_s25, 128  ;;  %s705_s28 = smov [#allocation2]  }
  0x3e   : > { %p616_p8 = scmp.ne.s32.totalorder %s834_s25, %s615_s27  ;;  %s620_s29 = sshll.u32 %s705_s28, 4  ;;  %s621_s29 = int_to_ptr.vmem [resolvable:$false] %s620_s29 }
  0x3f   : > { %s622_s23 = scalar_lea.vmem %s621_s29, 256  ;;  %p623_p3 = scmp.lt.s32.totalorder %s834_s25, %s621_s29 }
  0x40   : > { %p618_p10 = pnand %p616_p8, %p602_p0  ;;  %p624_p7 = scmp.lt.s32.totalorder %s622_s23, %s615_s27 }
  0x42   : > { %p619_p13 = pneg %p618_p10  ;;  %p625_p9 = por %p624_p7, %p623_p3 }
  0x44   : > { %p626_p2 = pnand %p625_p9, %p619_p13 }
  0x46   : > { %629 = shalt.err (!%p626_p2)
}
  0x47   : > { %501 = dma.hbm_to_vmem [thread:$0]  (!%p830_p11), %s828_s4, 128, %s834_s25, %s149_s5  }
  0x48   : > { %p948_p5 = scmp.ne.s32.totalorder %s943_s20, 0 }
  0x49   : > { %s864_s30 = sand.u32 (!%p948_p5), 1, %s692_s13   ;;  %p949_p0 = scmp.ne.s32.totalorder (!%p948_p5), %s941_s18, 0 }
  0x4a   : > { %168 = sbr.rel (%p948_p5) target bundleno = 367 (0x16f), region = 32  ;;  %s463_s22 = sshll.u32 (!%p948_p5), %s864_s30, 3 }
  0x4b   : > { %s171_s6 = scalar_lea.sflag (!%p948_p5), [#allocation3], %s864_s30  ;;  %s870_s7 = scalar_lea.vmem (!%p948_p5), [#allocation2], %s463_s22 }
  0x51   : > { %675 = dma.done.wait (%p949_p0), %s171_s6, 128  }
  0x52   : > { %677 = vsyncadd (%p949_p0), %s171_s6, 4294967168  ;;  %p950_p11 = scmp.eq.s32.totalorder %s749_s16, 0 }
  0x54   : > { %679 = dma.done.wait (%p950_p11), [#allocation6], 2048   ;;  %p951_p1 = pmov %p950_p11 }
  0x55   : > { %v706_v0 = vmov 0   ;;  %v546_v1 = vld [vmem:[#allocation5 + $0x4] ss:$8 sps:$4 sm:$0xff]   ;;  %v548_v2 = vld [vmem:[#allocation5] ss:$8 sps:$4 sm:$0xff]   ;;  %v202_v17 = vld [vmem:[%s870_s7] sm:$0xff]  ;;  %v222_v19 = vlaneseq }
  0x56   : > { %681 = vsyncadd (%p951_p1), [#allocation6], 4294965248  ;;  %344 = vmatprep.mubr.bf16.mxu0 %v706_v0  ;;  %312 = vmatprep.subr.bf16.mxu0 %v546_v1  ;;  %v549_v3 = vld [vmem:[#allocation5 + $0x14] ss:$8 sps:$4 sm:$0xff]   ;;  %v551_v4 = vld [vmem:[#allocation5 + $0x10] ss:$8 sps:$4 sm:$0xff]   ;;  %v203_v18 = vpack.c.bf16 %v202_v17, %v202_v17 }
  0x57   : > { %313 = vmatpush1.bf16.msra.mxu0 %v548_v2  ;;  %v552_v5 = vld [vmem:[#allocation5 + $0x24] ss:$8 sps:$4 sm:$0xff]   ;;  %v554_v6 = vld [vmem:[#allocation5 + $0x20] ss:$8 sps:$4 sm:$0xff]   ;;  %v555_v7 = vld [vmem:[#allocation5 + $0x34] ss:$8 sps:$4 sm:$0xff]  }
  0x58   : > { %314 = vmatprep.subr.bf16.mxu0 %v549_v3  ;;  %v557_v8 = vld [vmem:[#allocation5 + $0x30] ss:$8 sps:$4 sm:$0xff]   ;;  %v558_v9 = vld [vmem:[#allocation5 + $0x44] ss:$8 sps:$4 sm:$0xff]   ;;  %v560_v10 = vld [vmem:[#allocation5 + $0x40] ss:$8 sps:$4 sm:$0xff]  }
  0x59   : > { %v561_v11 = vld [vmem:[#allocation5 + $0x54] ss:$8 sps:$4 sm:$0xff]   ;;  %v563_v12 = vld [vmem:[#allocation5 + $0x50] ss:$8 sps:$4 sm:$0xff]   ;;  %v564_v13 = vld [vmem:[#allocation5 + $0x64] ss:$8 sps:$4 sm:$0xff]  }
  0x5a   : > { %v566_v14 = vld [vmem:[#allocation5 + $0x60] ss:$8 sps:$4 sm:$0xff]   ;;  %v567_v15 = vld [vmem:[#allocation5 + $0x74] ss:$8 sps:$4 sm:$0xff]   ;;  %v569_v16 = vld [vmem:[#allocation5 + $0x70] ss:$8 sps:$4 sm:$0xff]  }
  0x5b   : > { %315 = vmatpush1.bf16.msra.mxu0 %v551_v4  ;;  %v223_v20 = vshrl.u32 %v222_v19, 7  ;;  %v220_v22 = vld [vmem:[%s936_s2] sm:$0x3]  ;;  %s483_s4 = sshll.u32 %s749_s16, 7  ;;  %s200_s25 = scalar_lea.vmem [#allocation7], %s463_s22 }
  0x5c   : > { %316 = vmatprep.subr.bf16.mxu0 %v552_v5  ;;  %s376_s26 = sshll.u32 %s200_s25, 4  ;;  %s890_s9 = scalar_lea.hbm %s937_s3, %s483_s4  ;;  %s892_s26 = int_to_ptr.vmem [resolvable:$true] %s376_s26 }
  0x5d   : > { %v224_v21 = vsub.s32 0, %v223_v20  ;;  %v228_v27 = vsub.s32 1, %v223_v20  ;;  %s363_s10 = scalar_lea.sflag [#allocation4], %s864_s30  ;;  %s630_s11 = scalar_lea.vmem %s892_s26, 128 }
  0x5e   : > { %p631_p4 = scmp.ne.s32.totalorder %s892_s26, %s630_s11  ;;  %s707_s16 = smov [#allocation7]  }
  0x5f   : > { %317 = vmatpush1.bf16.msra.mxu0 %v554_v6  ;;  %v225_v23 = vrot.slane %v220_v22, %v224_v21  ;;  %v229_v31 = vrot.slane %v220_v22, %v228_v27  ;;  %s634_s27 = sshll.u32 %s707_s16, 4  ;;  %s635_s27 = int_to_ptr.vmem [resolvable:$false] %s634_s27 }
  0x60   : > { %318 = vmatprep.subr.bf16.mxu0 %v555_v7  ;;  %p632_p6 = pnand %p631_p4, %p819_p12  ;;  %s636_s28 = scalar_lea.vmem %s635_s27, 256 }
  0x61   : > { %p637_p10 = scmp.lt.s32.totalorder %s892_s26, %s635_s27  ;;  %p638_p13 = scmp.lt.s32.totalorder %s636_s28, %s630_s11 }
  0x62   : > { %p633_p8 = pneg %p632_p6 }
  0x63   : > { %319 = vmatpush1.bf16.msra.mxu0 %v557_v8  ;;  %p639_p3 = por %p638_p13, %p637_p10 }
  0x64   : > { %320 = vmatprep.subr.bf16.mxu0 %v558_v9 }
  0x65   : > { %p640_p7 = pnand %p639_p3, %p633_p8 }
  0x67   : > { %321 = vmatpush1.bf16.msra.mxu0 %v560_v10 }
  0x68   : > { %322 = vmatprep.subr.bf16.mxu0 %v561_v11 }
  0x6b   : > { %323 = vmatpush1.bf16.msra.mxu0 %v563_v12 }
  0x6c   : > { %324 = vmatprep.subr.bf16.mxu0 %v564_v13 }
  0x6f   : > { %325 = vmatpush1.bf16.msra.mxu0 %v566_v14 }
  0x70   : > { %326 = vmatprep.subr.bf16.mxu0 %v567_v15 }
  0x73   : > { %327 = vmatpush1.bf16.msra.mxu0 %v569_v16 }
  0x76   : > { %345 = vmatmul.mubr.bf16.vlgmr.msra.gmra.mrb[0].mxu0 %v203_v18 }
 0x149   : > { %v346_v24 = vpop.f32.mrb[0].mxu0 }
 0x14a   : > { %v347_v25 = vadd.f32 %v346_v24, %v225_v23  ;;  %v348_v26 = vpop.f32.mrb[1].mxu0 }
 0x14b   : > { %v350_v28 = vpop.f32.mrb[2].mxu0  ;;  %v349_v32 = vadd.f32 %v348_v26, %v229_v31 }
 0x14c   : > { %v353_v29 = vmul.f32 0.5, %v347_v25  ;;  %v351_v30 = vpop.f32.mrb[3].mxu0 }
 0x14d   : > { %v357_v33 = vmax.f32 %v349_v32, 0.0 }
 0x14e   : > { %570 = vtanh.f32 %v353_v29 }
 0x14f   : > { %v358_v37 = vsub.f32 %v357_v33, %v202_v17 }
 0x158   : > { %v571_v34 = vpop.eup %570 }
 0x159   : > { %v355_v35 = vadd.f32 1.0, %v571_v34 }
 0x15b   : > { %v356_v36 = vmul.f32 0.5, %v355_v35 }
 0x15d   : > { %v359_v38 = vmul.f32 %v358_v37, %v356_v36 }
 0x15f   : > { %v360_v39 = vadd.f32 %v359_v38, %v202_v17 }
 0x161   : > { %361 = vst [vmem:[%s200_s25] sm:$0xff] %v360_v39 }
 0x162   : > { %643 = shalt.err (!%p640_p7)
}
 0x163   : > { %s644_s29 = scalar_lea.hbm %s890_s9, 128  ;;  %s648_s22 = scalar_lea.hbm %s937_s3, 256 }
 0x164   : > { %p645_p9 = scmp.ne.s32.totalorder %s890_s9, %s644_s29  ;;  %p649_p0 = scmp.lt.u32.totalorder %s890_s9, %s937_s3 }
 0x165   : > { %p650_p11 = scmp.lt.u32.totalorder %s648_s22, %s644_s29  ;;  %p652_p4 = scmp.lt.u32.totalorder %s644_s29, %s890_s9 }
 0x166   : > { %p646_p2 = pnand %p645_p9, %p819_p12 }
 0x167   : > { %p651_p1 = por %p650_p11, %p649_p0 }
 0x168   : > { %p647_p5 = pneg %p646_p2 }
 0x169   : > { %p653_p6 = por %p652_p4, %p651_p1 }
 0x16b   : > { %p654_p8 = pnand %p653_p6, %p647_p5 }
 0x16d   : > { %657 = shalt.err (!%p654_p8)
}
 0x16e   : > { %492 = dma.vmem_to_hbm [thread:$0]  (%p819_p12), %s892_s26, 128, %s890_s9, %s363_s10  }
 0x16f PF: > { %s388_s18 = sand.u32 1, %s688_s12   ;;  %p952_p10 = scmp.ne.s32.totalorder %s942_s19, 0 }
 0x170   : > { %p953_p13 = scmp.ge.s32.totalorder %s700_s15, 2  ;;  %s389_s20 = scalar_lea.sflag [#allocation4], %s388_s18 }
 0x172   : > { %p503_p3 = pnand %p953_p13, %p952_p10 }
 0x174   : > { %683 = dma.done.wait (!%p503_p3), %s389_s20, 128  }
 0x175   : > { %685 = vsyncadd (!%p503_p3), %s389_s20, 4294967168  ;;  %p17_p7 = scmp.ge.s32.totalorder %s784_s24, 4   ;;  %s954_s12 = smov %s692_s13 }
 0x176   : > { %s955_s13 = smov %s696_s14  ;;  %s956_s14 = smov %s815_s17 }
 0x177   : > { %s957_s15 = smov %s784_s24  ;;  %19 = sbr.rel (!%p17_p7) target bundleno = 6 (0x6), region = 81 }
 0x17e   :  { %394 = vsyncpa [#allocation3], 1 }
 0x17f   :  { %396 = vsyncpa [#allocation3 + $0x1], 1 }
 0x180   :  { %397 = vsyncpa [#allocation6], 1 }
 0x181   :  { %398 = vsyncpa [#allocation4], 1 }
 0x182   :  { %400 = vsyncpa [#allocation4 + $0x1], 1 }

</bundles_post_ra>
